<compile_context>
chip_gen: v6e
topology: v6e:2x2x1
jax: 0.10.0
libtpu: 0.0.40
codegen_flags: <defaults>
</compile_context>

<pallas_src>
import jax
import jax.numpy as jnp
from jax.experimental import pallas as pl
from jax.experimental.pallas import tpu as pltpu


def _reluder_kernel(x_ref, o_ref):
    x = x_ref[...]
    # clamp to [0, 1] then ceil — same semantics (incl. NaN propagation) as
    # torch.ceil(torch.clamp(x, 0, 1)).  Integer literals avoid any dtype
    # promotion under JAX weak typing.
    o_ref[...] = jnp.ceil(jnp.clip(x, 0, 1)).astype(o_ref.dtype)


def reluder(x, *, lane_width=1024, target_block_bytes=2 * 1024 * 1024):
    """Elementwise ceil(clamp(x, 0, 1)) via a tiled, lane-dense Pallas kernel.

    Accepts any shape / floating dtype.  Internally flattens to 1-D, pads to a
    (rows, lane_width) slab whose rows divide evenly into ~2 MiB blocks, runs a
    1-D pipelined grid over the rows, then slices the padding off.
    """
    orig_shape = x.shape
    dtype = x.dtype
    n = x.size
    if n == 0:
        return x

    itemsize = jnp.dtype(dtype).itemsize
    # Packed-sublane alignment: f32 -> 8 rows, bf16 -> 16, int8/fp8 -> 32.
    sublane_pack = max(1, 4 // itemsize)
    row_align = 8 * sublane_pack

    cols = lane_width  # multiple of 128 lanes -> unmasked vst

    # Rows needed to hold n elements, aligned to the packed-sublane multiple.
    rows_needed = -(-n // cols)
    rows_needed = -(-rows_needed // row_align) * row_align

    # ~2 MiB blocks (in + out, double-buffered => ~4x this in VMEM).
    block_rows = (target_block_bytes // (cols * itemsize)) // row_align * row_align
    block_rows = max(row_align, block_rows)
    block_rows = min(block_rows, rows_needed)

    # Pad so the grid divides evenly (no partial / masked boundary blocks).
    rows = -(-rows_needed // block_rows) * block_rows
    n_pad = rows * cols

    x_flat = x.reshape(-1)
    if n_pad != n:
        x_flat = jnp.pad(x_flat, (0, n_pad - n))
    x2 = x_flat.reshape(rows, cols)

    grid = (rows // block_rows,)
    block = (block_rows, cols)

    out = pl.pallas_call(
        _reluder_kernel,
        out_shape=jax.ShapeDtypeStruct((rows, cols), dtype),
        grid_spec=pltpu.PrefetchScalarGridSpec(
            num_scalar_prefetch=0,
            grid=grid,
            in_specs=[pl.BlockSpec(block, lambda i: (i, 0))],
            out_specs=pl.BlockSpec(block, lambda i: (i, 0)),
        ),
        compiler_params=pltpu.CompilerParams(
            dimension_semantics=("parallel",),
        ),
    )(x2)

    return out.reshape(-1)[:n].reshape(orig_shape)


if __name__ == "__main__":
    key = jax.random.PRNGKey(0)
    # Small input consistent with the module (pure elementwise, any shape works).
    x = jax.random.normal(key, (2, 4, 16, 16), dtype=jnp.float32) * 2.0

    y = reluder(x)
    y = jax.block_until_ready(y)

    # Reference check against plain JAX (same semantics as the torch module).
    y_ref = jnp.ceil(jnp.clip(x, 0.0, 1.0))
    assert y.shape == x.shape and y.dtype == x.dtype
    assert jnp.allclose(y, y_ref), "mismatch vs reference"

    # Also exercise a non-tile-friendly odd shape through the padded path.
    x_odd = jax.random.normal(jax.random.PRNGKey(1), (3, 7, 13), dtype=jnp.float32)
    y_odd = jax.block_until_ready(reluder(x_odd))
    assert jnp.allclose(y_odd, jnp.ceil(jnp.clip(x_odd, 0.0, 1.0)))

    print("KERNEL_OK")
</pallas_src>

<mosaic_0001>
module attributes {stable_mosaic.version = 11 : i64} {
  func.func @_reluder_kernel(%arg0: i32, %arg1: memref<8x1024xf32, #tpu.memory_space<vmem>>, %arg2: memref<8x1024xf32, #tpu.memory_space<vmem>>) attributes {dimension_semantics = [#tpu.dimension_semantics<parallel>], iteration_bounds = array<i64: 1>, scalar_prefetch = 0 : i64, scratch_operands = 0 : i64, tpu.core_type = #tpu.core_type<tc>, window_params = [{transform_indices = @transform_0, window_bounds = array<i64: 8, 1024>}, {transform_indices = @transform_1, window_bounds = array<i64: 8, 1024>}]} {
    %c0 = arith.constant 0 : index
    %c0_0 = arith.constant 0 : index
    %0 = vector.load %arg1[%c0, %c0_0] : memref<8x1024xf32, #tpu.memory_space<vmem>>, vector<8x1024xf32>
    %c0_i32 = arith.constant 0 : i32
    %c1_i32 = arith.constant 1 : i32
    %1 = arith.sitofp %c0_i32 : i32 to f32
    %2 = vector.broadcast %1 : f32 to vector<8x1024xf32>
    %3 = arith.maximumf %2, %0 : vector<8x1024xf32>
    %4 = arith.sitofp %c1_i32 : i32 to f32
    %5 = vector.broadcast %4 : f32 to vector<8x1024xf32>
    %6 = arith.minimumf %5, %3 : vector<8x1024xf32>
    %7 = math.ceil %6 : vector<8x1024xf32>
    %c0_1 = arith.constant 0 : index
    %c0_2 = arith.constant 0 : index
    %8 = vector.load %arg2[%c0_1, %c0_2] : memref<8x1024xf32, #tpu.memory_space<vmem>>, vector<8x1024xf32>
    tpu.vector_store %arg2[%c0_1, %c0_2], %7 {strides = array<i32>} : memref<8x1024xf32, #tpu.memory_space<vmem>>, vector<8x1024xf32>,
    return
  }
  func.func @transform_0(%arg0: i32) -> (i32, i32) {
    %c0_i32 = arith.constant 0 : i32
    %c0_i32_0 = arith.constant 0 : i32
    return %arg0, %c0_i32 : i32, i32
  }
  func.func @transform_1(%arg0: i32) -> (i32, i32) {
    %c0_i32 = arith.constant 0 : i32
    %c0_i32_0 = arith.constant 0 : i32
    return %arg0, %c0_i32 : i32, i32
  }
}

</mosaic_0001>

<bundles_post_ra>
// kernel: tpu_custom_call.1
= control target key start
LH: loop header
LB: loop body
LE: loop exit
PB: predicated region body
PF: predicated region fallthrough
CT: control target
= control target key end

     0   :  { %6 = vsyncpa [#allocation3], 0  ;;  %s140_s0 = inlined_call_operand.hbm [shape: f32[8,1024], index: 0, kind: input, shape index: {}]   ;;  %s141_s1 = inlined_call_operand.hbm [shape: f32[8,1024], index: 1, kind: output, shape index: {}]  }
   0x1   :  { %7 = vsyncpa [#allocation4], 0  ;;  %s122_s6 = smov [#allocation2]  }
   0x2   :  { %s14_s7 = sshll.u32 %s122_s6, 4  ;;  %s15_s7 = int_to_ptr.vmem [resolvable:$true] %s14_s7 }
   0x3   :  { %s86_s8 = scalar_lea.vmem %s15_s7, 1024  ;;  %p91_p1 = scmp.lt.s32.totalorder %s15_s7, %s15_s7 }
   0x4   :  { %p87_p0 = scmp.ne.s32.totalorder %s15_s7, %s86_s8  ;;  %p92_p2 = scmp.lt.s32.totalorder %s86_s8, %s86_s8 }
   0x6   :  { %p93_p3 = por %p92_p2, %p91_p1 }
   0x8   :  { %p94_p4 = pnand %p93_p3, %p87_p0 }
   0xa   :  { %97 = shalt.err (!%p94_p4)
}
   0xb   :  { %17 = dma.hbm_to_vmem [thread:$0]  %s140_s0, 1024, %s15_s7, [#allocation3]  }
   0xc   :  { %118 = dma.done.wait [#allocation3], 1024  }
   0xd   :  { %119 = vsyncadd [#allocation3], 4294966272  ;;  %v21_v0 = vld [vmem:[#allocation2] sm:$0xff]  ;;  %v22_v1 = vld [vmem:[#allocation2 + $0x8] sm:$0xff]  ;;  %s123_s0 = smov [#allocation5]  }
   0xe   :  { %v23_v2 = vld [vmem:[#allocation2 + $0x10] sm:$0xff]  ;;  %v29_v3 = vmax.f32 %v21_v0, 0.0  ;;  %v30_v4 = vmax.f32 %v22_v1, 0.0  ;;  %v24_v6 = vld [vmem:[#allocation2 + $0x18] sm:$0xff]  ;;  %v25_v7 = vld [vmem:[#allocation2 + $0x20] sm:$0xff]  ;;  %s67_s11 = sshll.u32 %s123_s0, 4  ;;  %s68_s11 = int_to_ptr.vmem [resolvable:$true] %s67_s11 }
   0xf   :  { %v31_v5 = vmax.f32 %v23_v2, 0.0  ;;  %v26_v8 = vld [vmem:[#allocation2 + $0x28] sm:$0xff]  ;;  %v32_v9 = vmax.f32 %v24_v6, 0.0  ;;  %v33_v10 = vmax.f32 %v25_v7, 0.0  ;;  %v27_v12 = vld [vmem:[#allocation2 + $0x30] sm:$0xff]  ;;  %v28_v13 = vld [vmem:[#allocation2 + $0x38] sm:$0xff]  ;;  %p103_p6 = scmp.lt.s32.totalorder %s68_s11, %s68_s11 }
  0x10   :  { %v34_v11 = vmax.f32 %v26_v8, 0.0  ;;  %v37_v14 = vmin.f32 %v29_v3, 1.0  ;;  %v38_v15 = vmin.f32 %v30_v4, 1.0  ;;  %v35_v17 = vmax.f32 %v27_v12, 0.0  ;;  %s98_s12 = scalar_lea.vmem %s68_s11, 1024 }
  0x11   :  { %v39_v16 = vmin.f32 %v31_v5, 1.0  ;;  %v40_v18 = vmin.f32 %v32_v9, 1.0  ;;  %v41_v19 = vmin.f32 %v33_v10, 1.0  ;;  %v36_v21 = vmax.f32 %v28_v13, 0.0  ;;  %p99_p5 = scmp.ne.s32.totalorder %s68_s11, %s98_s12  ;;  %p104_p7 = scmp.lt.s32.totalorder %s98_s12, %s98_s12 }
  0x12   :  { %v42_v20 = vmin.f32 %v34_v11, 1.0  ;;  %v45_v22 = vceil.f32 %v37_v14  ;;  %v46_v23 = vceil.f32 %v38_v15  ;;  %v43_v25 = vmin.f32 %v35_v17, 1.0 }
  0x13   :  { %v47_v24 = vceil.f32 %v39_v16  ;;  %v48_v26 = vceil.f32 %v40_v18  ;;  %v49_v27 = vceil.f32 %v41_v19  ;;  %v44_v29 = vmin.f32 %v36_v21, 1.0  ;;  %p105_p8 = por %p104_p7, %p103_p6 }
  0x14   :  { %v50_v28 = vceil.f32 %v42_v20  ;;  %53 = vst [vmem:[#allocation5] sm:$0xff] %v45_v22  ;;  %54 = vst [vmem:[#allocation5 + $0x8] sm:$0xff] %v46_v23  ;;  %v51_v30 = vceil.f32 %v43_v25 }
  0x15   :  { %55 = vst [vmem:[#allocation5 + $0x10] sm:$0xff] %v47_v24  ;;  %56 = vst [vmem:[#allocation5 + $0x18] sm:$0xff] %v48_v26  ;;  %v52_v31 = vceil.f32 %v44_v29  ;;  %p106_p9 = pnand %p105_p8, %p99_p5 }
  0x16   :  { %57 = vst [vmem:[#allocation5 + $0x20] sm:$0xff] %v49_v27  ;;  %58 = vst [vmem:[#allocation5 + $0x28] sm:$0xff] %v50_v28 }
  0x17   :  { %59 = vst [vmem:[#allocation5 + $0x30] sm:$0xff] %v51_v30  ;;  %60 = vst [vmem:[#allocation5 + $0x38] sm:$0xff] %v52_v31 }
  0x18   :  { %109 = shalt.err (!%p106_p9)
}
  0x19   :  { %70 = dma.vmem_to_hbm [thread:$0]  %s68_s11, 1024, %s141_s1, [#allocation4]  }
  0x1a   :  { %120 = dma.done.wait [#allocation4], 1024  }
  0x1b   :  { %121 = vsyncadd [#allocation4], 4294966272 }
  0x1c   :  { %74 = vsyncpa [#allocation3], 1 }
  0x1d   :  { %75 = vsyncpa [#allocation4], 1 }

</bundles_post_ra>
